<compile_context>
chip_gen: v7x
topology: tpu7x:2x2x1
jax: 0.10.0
libtpu: 0.0.40
codegen_flags: <defaults>
</compile_context>

<pallas_src>
import functools

import jax
import jax.numpy as jnp
import numpy as np
from jax.experimental import pallas as pl
from jax.experimental.pallas import tpu as pltpu

LEAKY_SLOPE = 0.1
TM_MAX = 512                      # M-tile upper bound for the im2col GEMMs
VMEM_LIMIT = 32 * 1024 * 1024     # explicit scoped-VMEM budget (safe on v5e/v6e/v7x)

MODEL_CONFIG = {
    "anchors": [[10, 13, 16, 30, 33, 23],
                [30, 61, 62, 45, 59, 119],
                [116, 90, 156, 198, 373, 326]],
    "angles": [-60, -30, 0, 30, 60, 90],
}
STRIDES = [8, 16, 32]
NA = 3  # anchors per scale


def make_anchors(strides, anchors):
    # mirrors Yolo._make_anchors (csl mode): anchors divided by stride
    an = []
    for stride, anchor in zip(strides, anchors):
        tmp = []
        for i in range(0, len(anchor), 2):
            tmp.append([anchor[i] / stride, anchor[i + 1] / stride])
        an.append(tmp)
    return an


def _round_up(x, m):
    return (x + m - 1) // m * m


# ----------------------------------------------------------------------------
# Pallas kernels
# ----------------------------------------------------------------------------
def _gemm_bias_act_kernel(a_ref, w_ref, b_ref, o_ref, *, act):
    """bf16 GEMM tile + f32 bias (+ leaky ReLU) epilogue."""
    acc = jnp.dot(a_ref[...], w_ref[...], preferred_element_type=jnp.float32)
    acc = acc + b_ref[...]
    if act:
        acc = jnp.where(acc > 0, acc, LEAKY_SLOPE * acc)
    o_ref[...] = acc.astype(o_ref.dtype)


def _head_decode_kernel(a_ref, w_ref, b_ref, meta_ref, o_ref, *,
                        tm, width, height, stride, decode):
    """1x1-conv head GEMM with fused sigmoid + CSL box decode epilogue.

    meta_ref rows: [is_xy(col), is_x(col), is_wh(col), anchor_px(col)].
    """
    acc = jnp.dot(a_ref[...], w_ref[...], preferred_element_type=jnp.float32)
    acc = acc + b_ref[...]
    if not decode:
        o_ref[...] = acc.astype(o_ref.dtype)
        return

    sig = jax.nn.sigmoid(acc)

    # Per-row grid coordinates.  Row index within the flattened (B*H*W) map:
    #   r = b*H*W + gy*W + gx.
    # Exact floor division via float math (valid for M < 2^23 rows).
    r = (pl.program_id(0) * tm
         + jax.lax.broadcasted_iota(jnp.int32, (tm, 1), 0)).astype(jnp.float32)
    row_div_w = jnp.floor((r + 0.5) / float(width))          # = b*H + gy
    gx = r - row_div_w * float(width)
    gy = row_div_w - jnp.floor((row_div_w + 0.5) / float(height)) * float(height)

    meta = meta_ref[...]
    is_xy = meta[0:1, :]
    is_x = meta[1:2, :]
    is_wh = meta[2:3, :]
    anc = meta[3:4, :]      # anchor in pixels (already * stride), 0 elsewhere

    g = is_x * gx + (1.0 - is_x) * gy
    box_xy = (sig * 2.0 - 0.5 + g) * stride
    s2 = sig * 2.0
    box_wh = s2 * s2 * anc
    out = jnp.where(is_xy > 0, box_xy, jnp.where(is_wh > 0, box_wh, sig))
    o_ref[...] = out.astype(o_ref.dtype)


# ----------------------------------------------------------------------------
# Wrappers
# ----------------------------------------------------------------------------
def matmul_bias_act(a, w_mat, b, *, act=True, out_dtype=jnp.bfloat16):
    """(M, K) @ (K, N) + bias (+ leaky ReLU), bf16 MXU, tiled over M."""
    m, k = a.shape
    n = w_mat.shape[1]
    tm = min(TM_MAX, _round_up(m, 8))
    return pl.pallas_call(
        functools.partial(_gemm_bias_act_kernel, act=act),
        out_shape=jax.ShapeDtypeStruct((m, n), out_dtype),
        grid=(pl.cdiv(m, tm),),
        in_specs=[
            pl.BlockSpec((tm, k), lambda i: (i, 0)),
            pl.BlockSpec((k, n), lambda i: (0, 0)),
            pl.BlockSpec((1, n), lambda i: (0, 0)),
        ],
        out_specs=pl.BlockSpec((tm, n), lambda i: (i, 0)),
        compiler_params=pltpu.CompilerParams(
            dimension_semantics=("parallel",),
            vmem_limit_bytes=VMEM_LIMIT),
    )(a.astype(jnp.bfloat16), w_mat.astype(jnp.bfloat16), b.astype(jnp.float32))


def conv2d(x, w_mat, b, *, k, stride, act=True):
    """NHWC conv via im2col GEMM.  Patches materialized in bf16 (see TODO)."""
    B, H, W, C = x.shape
    pad = (k - 1) // 2
    Ho = (H + 2 * pad - k) // stride + 1
    Wo = (W + 2 * pad - k) // stride + 1
    x = x.astype(jnp.bfloat16)
    xp = jnp.pad(x, ((0, 0), (pad, pad), (pad, pad), (0, 0)))
    patches = []
    for kh in range(k):
        for kw in range(k):
            patches.append(
                xp[:, kh:kh + (Ho - 1) * stride + 1:stride,
                      kw:kw + (Wo - 1) * stride + 1:stride, :])
    p = jnp.concatenate(patches, axis=-1)           # (B, Ho, Wo, k*k*C), bf16
    p = p.reshape(B * Ho * Wo, k * k * C)
    out = matmul_bias_act(p, w_mat, b, act=act, out_dtype=jnp.bfloat16)
    return out.reshape(B, Ho, Wo, w_mat.shape[1])


def make_col_meta(anchors_s, stride, no):
    """Per-output-column decode constants: [is_xy, is_x, is_wh, anchor_px]."""
    n = len(anchors_s) * no
    meta = np.zeros((4, n), np.float32)
    for a_i, (aw, ah) in enumerate(anchors_s):
        base = a_i * no
        meta[0, base + 0] = 1.0
        meta[0, base + 1] = 1.0
        meta[1, base + 0] = 1.0
        meta[2, base + 2] = 1.0
        meta[2, base + 3] = 1.0
        meta[3, base + 2] = aw * stride   # anchors stored /stride; decode * stride
        meta[3, base + 3] = ah * stride
    return jnp.asarray(meta)


def head_conv_decode(x_nhwc, w_mat, b, col_meta, *, stride, decode):
    """1x1 conv head + (optionally) fused CSL decode.  Output f32 (B,H,W,na*no)."""
    B, H, W, Cin = x_nhwc.shape
    n = w_mat.shape[1]
    m = B * H * W
    a = x_nhwc.reshape(m, Cin)
    tm = min(TM_MAX, _round_up(m, 8))
    out = pl.pallas_call(
        functools.partial(_head_decode_kernel, tm=tm, width=W, height=H,
                          stride=float(stride), decode=decode),
        out_shape=jax.ShapeDtypeStruct((m, n), jnp.float32),
        grid=(pl.cdiv(m, tm),),
        in_specs=[
            pl.BlockSpec((tm, Cin), lambda i: (i, 0)),
            pl.BlockSpec((Cin, n), lambda i: (0, 0)),
            pl.BlockSpec((1, n), lambda i: (0, 0)),
            pl.BlockSpec((4, n), lambda i: (0, 0)),
        ],
        out_specs=pl.BlockSpec((tm, n), lambda i: (i, 0)),
        compiler_params=pltpu.CompilerParams(
            dimension_semantics=("parallel",),
            vmem_limit_bytes=VMEM_LIMIT),
    )(a.astype(jnp.bfloat16), w_mat.astype(jnp.bfloat16),
      b.astype(jnp.float32), col_meta)
    return out.reshape(B, H, W, n)


def init_params(key, n_classes):
    output_ch = (4 + 180 + 1 + n_classes) * 3    # csl mode
    backbone_chans = [(3, 16), (16, 32), (32, 64), (64, 128), (128, 256)]
    params = {"backbone": [], "neck": []}
    for cin, cout in backbone_chans:
        key, kw, kb = jax.random.split(key, 3)
        w = jax.random.normal(kw, (9 * cin, cout), jnp.float32) / np.sqrt(9 * cin)
        b = jax.random.normal(kb, (1, cout), jnp.float32) * 0.01
        params["backbone"].append((w, b))
    for cin in (64, 128, 256):
        key, kw, kb = jax.random.split(key, 3)
        w = jax.random.normal(kw, (cin, output_ch), jnp.float32) / np.sqrt(cin)
        b = jax.random.normal(kb, (1, output_ch), jnp.float32) * 0.01
        params["neck"].append((w, b))
    return params, output_ch


def yolo_forward(x_nchw, params, anchors, n_classes, training=False):
    x = jnp.transpose(x_nchw, (0, 2, 3, 1)).astype(jnp.bfloat16)   # NCHW -> NHWC
    feats, h = [], x
    for i, (w, b) in enumerate(params["backbone"]):
        h = conv2d(h, w, b, k=3, stride=2, act=True)
        if i >= 2:                      # strides 8, 16, 32
            feats.append(h)
    d3, d4, d5 = feats

    no = 4 + 180 + 1 + n_classes
    heads = []
    for f, (w, b), a_s, s in zip((d3, d4, d5), params["neck"], anchors, STRIDES):
        cm = make_col_meta(a_s, s, no)
        heads.append(head_conv_decode(f, w, b, cm, stride=s, decode=not training))

    if training:
        outs = []
        for h_ in heads:
            B, H, W, _ = h_.shape
            outs.append(h_.reshape(B, H, W, NA, no).transpose(0, 3, 1, 2, 4))
        return outs

    outs = []
    for h_ in heads:
        B, H, W, _ = h_.shape
        d = h_.reshape(B, H, W, NA, no).transpose(0, 3, 1, 2, 4)
        outs.append(d.reshape(B, NA * H * W, no))
    return jnp.concatenate(outs, axis=1)


if __name__ == "__main__":
    n_classes = 2
    key = jax.random.PRNGKey(0)
    key, kx = jax.random.split(key)
    x = jax.random.normal(kx, (2, 3, 64, 64), jnp.float32)   # NCHW like PyTorch
    params, output_ch = init_params(jax.random.PRNGKey(0), n_classes)
    anchors = make_anchors(STRIDES, MODEL_CONFIG["anchors"])

    out = yolo_forward(x, params, anchors, n_classes, training=False)
    out = jax.block_until_ready(out)

    no = 4 + 180 + 1 + n_classes
    expected_boxes = 3 * (8 * 8 + 4 * 4 + 2 * 2)             # 3 anchors/scale
    assert out.shape == (2, expected_boxes, no), out.shape
    assert bool(jnp.all(jnp.isfinite(out)))
    print("KERNEL_OK")
</pallas_src>

<mosaic_0001>
module attributes {stable_mosaic.version = 11 : i64} {
  func.func @_gemm_bias_act_kernel(%arg0: i32, %arg1: memref<512x27xbf16, #tpu.memory_space<vmem>>, %arg2: memref<27x16xbf16, #tpu.memory_space<vmem>>, %arg3: memref<1x16xf32, #tpu.memory_space<vmem>>, %arg4: memref<512x16xbf16, #tpu.memory_space<vmem>>) attributes {dimension_semantics = [#tpu.dimension_semantics<parallel>], iteration_bounds = array<i64: 4>, scalar_prefetch = 0 : i64, scratch_operands = 0 : i64, tpu.core_type = #tpu.core_type<tc>, window_params = [{transform_indices = @transform_0, window_bounds = array<i64: 512, 27>}, {pipeline_mode = #tpu.pipeline_mode<synchronous>, transform_indices = @transform_1, window_bounds = array<i64: 27, 16>}, {pipeline_mode = #tpu.pipeline_mode<synchronous>, transform_indices = @transform_2, window_bounds = array<i64: 1, 16>}, {transform_indices = @transform_3, window_bounds = array<i64: 512, 16>}]} {
    %c0 = arith.constant 0 : index
    %c0_0 = arith.constant 0 : index
    %0 = vector.load %arg1[%c0, %c0_0] : memref<512x27xbf16, #tpu.memory_space<vmem>>, vector<512x27xbf16>
    %c0_1 = arith.constant 0 : index
    %c0_2 = arith.constant 0 : index
    %1 = vector.load %arg2[%c0_1, %c0_2] : memref<27x16xbf16, #tpu.memory_space<vmem>>, vector<27x16xbf16>
    %cst = arith.constant dense<0.000000e+00> : vector<512x16xf32>
    %2 = tpu.matmul %0, %1, %cst {dimension_numbers = #tpu.dot_dimension_numbers<[1], [0], [0], [1], [0, 0, 1, 1], [], []>} : vector<512x27xbf16>, vector<27x16xbf16>, vector<512x16xf32> -> vector<512x16xf32>
    %c0_3 = arith.constant 0 : index
    %c0_4 = arith.constant 0 : index
    %3 = vector.load %arg3[%c0_3, %c0_4] : memref<1x16xf32, #tpu.memory_space<vmem>>, vector<1x16xf32>
    %4 = vector.broadcast %3 : vector<1x16xf32> to vector<512x16xf32>
    %5 = arith.addf %2, %4 : vector<512x16xf32>
    %cst_5 = arith.constant 0.000000e+00 : f32
    %6 = vector.broadcast %cst_5 : f32 to vector<512x16xf32>
    %7 = arith.cmpf ogt, %5, %6 : vector<512x16xf32>
    %cst_6 = arith.constant 1.000000e-01 : f32
    %8 = vector.broadcast %cst_6 : f32 to vector<512x16xf32>
    %9 = arith.mulf %8, %5 : vector<512x16xf32>
    %10 = arith.select %7, %5, %9 : vector<512x16xi1>, vector<512x16xf32>
    %11 = arith.truncf %10 : vector<512x16xf32> to vector<512x16xbf16>
    %c0_7 = arith.constant 0 : index
    %c0_8 = arith.constant 0 : index
    %12 = vector.load %arg4[%c0_7, %c0_8] : memref<512x16xbf16, #tpu.memory_space<vmem>>, vector<512x16xbf16>
    tpu.vector_store %arg4[%c0_7, %c0_8], %11 {strides = array<i32>} : memref<512x16xbf16, #tpu.memory_space<vmem>>, vector<512x16xbf16>,
    return
  }
  func.func @transform_0(%arg0: i32) -> (i32, i32) {
    %c0_i32 = arith.constant 0 : i32
    %c0_i32_0 = arith.constant 0 : i32
    return %arg0, %c0_i32 : i32, i32
  }
  func.func @transform_1(%arg0: i32) -> (i32, i32) {
    %c0_i32 = arith.constant 0 : i32
    %c0_i32_0 = arith.constant 0 : i32
    %c0_i32_1 = arith.constant 0 : i32
    return %c0_i32, %c0_i32_0 : i32, i32
  }
  func.func @transform_2(%arg0: i32) -> (i32, i32) {
    %c0_i32 = arith.constant 0 : i32
    %c0_i32_0 = arith.constant 0 : i32
    %c0_i32_1 = arith.constant 0 : i32
    return %c0_i32, %c0_i32_0 : i32, i32
  }
  func.func @transform_3(%arg0: i32) -> (i32, i32) {
    %c0_i32 = arith.constant 0 : i32
    %c0_i32_0 = arith.constant 0 : i32
    return %arg0, %c0_i32 : i32, i32
  }
}

</mosaic_0001>

<bundles_post_ra>
// kernel: tpu_custom_call.1
= control target key start
LH: loop header
LB: loop body
LE: loop exit
PB: predicated region body
PF: predicated region fallthrough
CT: control target
= control target key end

     0   :  { %s1767_s12 = smov 0   ;;  %s2127_s0 = inlined_call_operand.vmem [shape: bf16[2048,27], index: 0, kind: input, shape index: {}]   ;;  %s2128_s1 = inlined_call_operand.vmem [shape: bf16[27,16], index: 1, kind: input, shape index: {}]   ;;  %s2129_s2 = inlined_call_operand.vmem [shape: f32[1,16], index: 2, kind: input, shape index: {}]   ;;  %s2130_s3 = inlined_call_operand.vmem [shape: bf16[2048,16], index: 3, kind: output, shape index: {}]  }
   0x1 LB: > { %s1383_s13 = sadd.s32 4294967295, %s1744_s12   ;;  %p1387_p0 = scmp.ge.s32.totalorder %s1744_s12, 1  ;;  %s1744_s12 = sphi %s1767_s12, %s13_s12  }
   0x2   : > { %p138_p1 = scmp.lt.s32.totalorder %s1744_s12, 5 }
   0x4   : > { %p139_p2 = pnand %p1387_p0, %p138_p1 }
   0x5   : > { %v1704_v0 = vld [vmem:[%s2128_s1] sm:$0xff] (!%p139_p2)   ;;  %vm518_vm0 = vcmask (!%p139_p2), 1044480   ;;  %v1705_v1 = vld [vmem:[%s2128_s1 + $0x8] sm:$0x3f] (!%p139_p2)   ;;  %vm519_vm1 = vcmask (!%p139_p2), 1045504   ;;  %s1388_s18 = sshll.u32 (!%p139_p2), %s1383_s13, 6 }
   0x6   : > { %142 = sbr.rel (%p139_p2) target bundleno = 317 (0x13d), region = 32  ;;  %1623 = vmatprep.subr.bf16.mxu0 (!%p139_p2), %v1704_v0  ;;  %1691 = vmatprep.subr.bf16.mxu1 (!%p139_p2), %v1704_v0  ;;  %v1746_v2 = vmov (!%p139_p2), 65535   ;;  %p163_p3 = scmp.lt.s32.totalorder (!%p139_p2), %s1388_s18, 255  ;;  %vm421_vm2 = vcmask (!%p139_p2), 220160   ;;  %v1858_v38 = vld [vmem:[%s2129_s2] ss:$0 sm:$0xff] (!%p139_p2) }
   0x7   : > { %1624 = vmatpush3.bf16.msra.mxu0 (!%p139_p2), %v1704_v0  ;;  %1693 = vmatpush3.bf16.msra.mxu1 (!%p139_p2), %v1704_v0  ;;  %v520_v3 = vsel (!%p139_p2), %vm518_vm0, 4294967295, %v1746_v2  ;;  %vm1262_vm3 = vcmask (!%p139_p2), 125952  }
   0x8   : > { %v521_v4 = vsel (!%p139_p2), %vm519_vm1, %v520_v3, 0 }
   0x9   : > { %v523_v5 = vand.u32 (!%p139_p2), %v1705_v1, %v521_v4 }
   0xb   : > { %1625 = vmatprep.subr.bf16.mxu0 (!%p139_p2), %v523_v5  ;;  %1692 = vmatprep.subr.bf16.mxu1 (!%p139_p2), %v523_v5 }
   0xc   : > { %1626 = vmatpush3.bf16.msra.mxu0 (!%p139_p2), %v523_v5  ;;  %1694 = vmatpush3.bf16.msra.mxu1 (!%p139_p2), %v523_v5 }
   0xd   : > { %s2132_s18 = smov (!%p163_p3, %s1388_s18), 255 }
   0xe   : > { %s1389_s19 = sshll.u32 %s2132_s18, 2 }
   0xf   : > { %s1789_s22 = scalar_lea.vmem %s2127_s0, %s1389_s19  ;;  %s1870_s27 = scalar_lea.vmem %s2130_s3, %s1389_s19 }
  0x10   : > { %v1706_v6 = vld [vmem:[%s1789_s22] sm:$0xff]   ;;  %v1708_v8 = vld [vmem:[%s1789_s22 + $0x8] sm:$0xff]   ;;  %v1710_v10 = vld [vmem:[%s1789_s22 + $0x10] sm:$0xff]  }
  0x11   : > { %v1707_v7 = vld [vmem:[%s1789_s22 + $0x80] sm:$0xff]   ;;  %1627 = vmatprep.mubr.msk.bf16.mxu0 %vm421_vm2, %v1706_v6  ;;  %v1709_v9 = vld [vmem:[%s1789_s22 + $0x88] sm:$0xff]   ;;  %v1711_v11 = vld [vmem:[%s1789_s22 + $0x90] sm:$0xff]  }
  0x12   : > { %1659 = vmatprep.mubr.msk.bf16.mxu1 %vm421_vm2, %v1707_v7  ;;  %1628 = vmatmul.mubr.msk.bf16.vlgmr.msra.gmra.mrb[0].mxu0 %vm421_vm2, %v1708_v8  ;;  %v1712_v12 = vld [vmem:[%s1789_s22 + $0x18] sm:$0xff]   ;;  %v1714_v14 = vld [vmem:[%s1789_s22 + $0x20] sm:$0xff]   ;;  %v1716_v16 = vld [vmem:[%s1789_s22 + $0x28] sm:$0xff]  }
  0x13   : > { %1660 = vmatmul.mubr.msk.bf16.vlgmr.msra.gmra.mrb[0].mxu1 %vm421_vm2, %v1709_v9  ;;  %1631 = vmatprep.mubr.msk.bf16.mxu0 %vm421_vm2, %v1710_v10  ;;  %v1713_v13 = vld [vmem:[%s1789_s22 + $0x98] sm:$0xff]   ;;  %v1715_v15 = vld [vmem:[%s1789_s22 + $0xa0] sm:$0xff]   ;;  %v1717_v17 = vld [vmem:[%s1789_s22 + $0xa8] sm:$0xff]  }
  0x14   : > { %1663 = vmatprep.mubr.msk.bf16.mxu1 %vm421_vm2, %v1711_v11  ;;  %v1718_v18 = vld [vmem:[%s1789_s22 + $0x30] sm:$0xff]   ;;  %v1720_v20 = vld [vmem:[%s1789_s22 + $0x38] sm:$0xff]   ;;  %v1722_v22 = vld [vmem:[%s1789_s22 + $0x40] sm:$0xff]  }
  0x15   : > { %v1719_v19 = vld [vmem:[%s1789_s22 + $0xb0] sm:$0xff]   ;;  %v1721_v21 = vld [vmem:[%s1789_s22 + $0xb8] sm:$0xff]   ;;  %v1723_v23 = vld [vmem:[%s1789_s22 + $0xc0] sm:$0xff]  }
  0x16   : > { %v1724_v24 = vld [vmem:[%s1789_s22 + $0x48] sm:$0xff]   ;;  %v1726_v26 = vld [vmem:[%s1789_s22 + $0x50] sm:$0xff]   ;;  %v1728_v28 = vld [vmem:[%s1789_s22 + $0x58] sm:$0xff]  }
  0x17   : > { %v1725_v25 = vld [vmem:[%s1789_s22 + $0xc8] sm:$0xff]   ;;  %v1727_v27 = vld [vmem:[%s1789_s22 + $0xd0] sm:$0xff]   ;;  %v1729_v29 = vld [vmem:[%s1789_s22 + $0xd8] sm:$0xff]  }
  0x18   : > { %v1730_v30 = vld [vmem:[%s1789_s22 + $0x60] sm:$0xff]   ;;  %v1732_v32 = vld [vmem:[%s1789_s22 + $0x68] sm:$0xff]   ;;  %v1734_v34 = vld [vmem:[%s1789_s22 + $0x70] sm:$0xff]  }
  0x19   : > { %v1731_v31 = vld [vmem:[%s1789_s22 + $0xe0] sm:$0xff]   ;;  %v1733_v33 = vld [vmem:[%s1789_s22 + $0xe8] sm:$0xff]   ;;  %v1735_v35 = vld [vmem:[%s1789_s22 + $0xf0] sm:$0xff]  }
  0x1a   : > { %1632 = vmatmul.mubr.msk.bf16.gmra.mrb[4].mxu0 %vm421_vm2, %v1712_v12  ;;  %v1736_v36 = vld [vmem:[%s1789_s22 + $0x78] sm:$0xff]  }
  0x1b   : > { %1664 = vmatmul.mubr.msk.bf16.gmra.mrb[4].mxu1 %vm421_vm2, %v1713_v13  ;;  %1635 = vmatprep.mubr.msk.bf16.mxu0 %vm421_vm2, %v1714_v14  ;;  %v1737_v37 = vld [vmem:[%s1789_s22 + $0xf8] sm:$0xff]  }
  0x1c   : > { %1667 = vmatprep.mubr.msk.bf16.mxu1 %vm421_vm2, %v1715_v15 }
  0x22   : > { %1636 = vmatmul.mubr.msk.bf16.gmra.mrb[8].mxu0 %vm421_vm2, %v1716_v16 }
  0x23   : > { %1668 = vmatmul.mubr.msk.bf16.gmra.mrb[8].mxu1 %vm421_vm2, %v1717_v17  ;;  %1639 = vmatprep.mubr.msk.bf16.mxu0 %vm421_vm2, %v1718_v18 }
  0x24   : > { %1671 = vmatprep.mubr.msk.bf16.mxu1 %vm421_vm2, %v1719_v19 }
  0x2a   : > { %1640 = vmatmul.mubr.msk.bf16.gmra.mrb[12].mxu0 %vm421_vm2, %v1720_v20 }
  0x2b   : > { %1672 = vmatmul.mubr.msk.bf16.gmra.mrb[12].mxu1 %vm421_vm2, %v1721_v21  ;;  %1643 = vmatprep.mubr.msk.bf16.mxu0 %vm421_vm2, %v1722_v22 }
  0x2c   : > { %1675 = vmatprep.mubr.msk.bf16.mxu1 %vm421_vm2, %v1723_v23 }
  0x32   : > { %1644 = vmatmul.mubr.msk.bf16.gmra.mrb[16].mxu0 %vm421_vm2, %v1724_v24 }
  0x33   : > { %1676 = vmatmul.mubr.msk.bf16.gmra.mrb[16].mxu1 %vm421_vm2, %v1725_v25  ;;  %1647 = vmatprep.mubr.msk.bf16.mxu0 %vm421_vm2, %v1726_v26 }
  0x34   : > { %1679 = vmatprep.mubr.msk.bf16.mxu1 %vm421_vm2, %v1727_v27 }
  0x3a   : > { %1648 = vmatmul.mubr.msk.bf16.gmra.mrb[20].mxu0 %vm421_vm2, %v1728_v28 }
  0x3b   : > { %1680 = vmatmul.mubr.msk.bf16.gmra.mrb[20].mxu1 %vm421_vm2, %v1729_v29  ;;  %1651 = vmatprep.mubr.msk.bf16.mxu0 %vm421_vm2, %v1730_v30 }
  0x3c   : > { %1683 = vmatprep.mubr.msk.bf16.mxu1 %vm421_vm2, %v1731_v31 }
  0x42   : > { %1652 = vmatmul.mubr.msk.bf16.gmra.mrb[24].mxu0 %vm421_vm2, %v1732_v32 }
  0x43   : > { %1684 = vmatmul.mubr.msk.bf16.gmra.mrb[24].mxu1 %vm421_vm2, %v1733_v33  ;;  %1655 = vmatprep.mubr.msk.bf16.mxu0 %vm421_vm2, %v1734_v34 }
  0x44   : > { %1687 = vmatprep.mubr.msk.bf16.mxu1 %vm421_vm2, %v1735_v35 }
  0x4a   : > { %1656 = vmatmul.mubr.msk.bf16.gmra.mrb[28].mxu0 %vm421_vm2, %v1736_v36 }
  0x4b   : > { %1688 = vmatmul.mubr.msk.bf16.gmra.mrb[28].mxu1 %vm421_vm2, %v1737_v37 }
  0xe5   : > { %v1629_v39 = vpop.f32.mrb[0].mxu0 }
  0xe6   : > { %v568_v40 = vadd.f32 %v1629_v39, %v1858_v38  ;;  %v1661_v41 = vpop.f32.mrb[0].mxu1  ;;  %v559_v42 = vpop.f32.mrb[1].mxu0 }
  0xe7   : > { %v696_v43 = vadd.f32 %v1661_v41, %v1858_v38  ;;  %v560_v44 = vadd.f32 %v1858_v38, %v559_v42  ;;  %v687_v45 = vpop.f32.mrb[1].mxu1  ;;  %v1630_v46 = vpop.f32.mrb[2].mxu0 }
  0xe8   : > { %vm816_vm4 = vcmp.gt.f32.partialorder %v568_v40, 0.0  ;;  %v880_v47 = vmul.f32 0.1, %v568_v40  ;;  %v688_v48 = vadd.f32 %v1858_v38, %v687_v45  ;;  %v571_v49 = vadd.f32 %v1630_v46, %v1858_v38  ;;  %v1662_v50 = vpop.f32.mrb[2].mxu1  ;;  %v562_v51 = vpop.f32.mrb[3].mxu0 }
  0xe9   : > { %vm848_vm5 = vcmp.gt.f32.partialorder %v696_v43, 0.0  ;;  %v912_v52 = vmul.f32 0.1, %v696_v43  ;;  %vm814_vm6 = vcmp.gt.f32.partialorder %v560_v44, 0.0  ;;  %v878_v53 = vmul.f32 0.1, %v560_v44 }
  0xea   : > { %v944_v54 = vsel %vm816_vm4, %v568_v40, %v880_v47  ;;  %vm846_vm7 = vcmp.gt.f32.partialorder %v688_v48, 0.0  ;;  %v910_v55 = vmul.f32 0.1, %v688_v48  ;;  %vm817_vm8 = vcmp.gt.f32.partialorder %v571_v49, 0.0  ;;  %v690_v56 = vpop.f32.mrb[3].mxu1 }
  0xeb   : > { %v1527_v57 = vpack.c.bf16 %v944_v54, %v944_v54  ;;  %v976_v58 = vsel %vm848_vm5, %v696_v43, %v912_v52  ;;  %v942_v59 = vsel %vm814_vm6, %v560_v44, %v878_v53  ;;  %v881_v60 = vmul.f32 0.1, %v571_v49 }
  0xec   : > { %v1559_v61 = vpack.c.bf16 %v976_v58, %v976_v58  ;;  %v1525_v62 = vpack.c.bf16 %v942_v59, %v942_v59  ;;  %v974_v63 = vsel %vm846_vm7, %v688_v48, %v910_v55  ;;  %v699_v0 = vadd.f32 %v1662_v50, %v1858_v38 }
  0xed   : > { %1265 = vst.msk [vmem:[%s1870_s27 + $0x8] sm:$0xf] %vm1262_vm3, %v1527_v57  ;;  %v1557_v1 = vpack.c.bf16 %v974_v63, %v974_v63  ;;  %v945_v2 = vsel %vm817_vm8, %v571_v49, %v881_v60  ;;  %v563_v3 = vadd.f32 %v1858_v38, %v562_v51  ;;  %v691_v4 = vadd.f32 %v1858_v38, %v690_v56  ;;  %v1633_v5 = vpop.f32.mrb[4].mxu0 }
  0xee   : > { %1297 = vst.msk [vmem:[%s1870_s27 + $0x88] sm:$0xf] %vm1262_vm3, %v1559_v61  ;;  %1263 = vst.msk [vmem:[%s1870_s27] sm:$0xf] %vm1262_vm3, %v1525_v62  ;;  %v1528_v6 = vpack.c.bf16 %v945_v2, %v945_v2  ;;  %vm849_vm9 = vcmp.gt.f32.partialorder %v699_v0, 0.0  ;;  %v584_v8 = vadd.f32 %v1633_v5, %v1858_v38  ;;  %v1665_v9 = vpop.f32.mrb[4].mxu1 }
  0xef   : > { %v913_v7 = vmul.f32 0.1, %v699_v0  ;;  %v575_v10 = vpop.f32.mrb[5].mxu0  ;;  %1295 = vst.msk [vmem:[%s1870_s27 + $0x80] sm:$0xf] %vm1262_vm3, %v1557_v1  ;;  %vm815_vm10 = vcmp.gt.f32.partialorder %v563_v3, 0.0  ;;  %v712_v15 = vadd.f32 %v1665_v9, %v1858_v38 }
  0xf0   : > { %v879_v11 = vmul.f32 0.1, %v563_v3  ;;  %vm847_vm11 = vcmp.gt.f32.partialorder %v691_v4, 0.0  ;;  %v911_v12 = vmul.f32 0.1, %v691_v4  ;;  %vm820_vm12 = vcmp.gt.f32.partialorder %v584_v8, 0.0 }
  0xf1   : > { %1266 = vst.msk [vmem:[%s1870_s27 + $0xc] sm:$0xf] %vm1262_vm3, %v1528_v6  ;;  %v977_v13 = vsel %vm849_vm9, %v699_v0, %v913_v7  ;;  %v884_v14 = vmul.f32 0.1, %v584_v8  ;;  %v703_v16 = vpop.f32.mrb[5].mxu1  ;;  %v1634_v17 = vpop.f32.mrb[6].mxu0  ;;  %v576_v21 = vadd.f32 %v1858_v38, %v575_v10 }
  0xf2   : > { %v1560_v18 = vpack.c.bf16 %v977_v13, %v977_v13  ;;  %v943_v19 = vsel %vm815_vm10, %v563_v3, %v879_v11  ;;  %v975_v20 = vsel %vm847_vm11, %v691_v4, %v911_v12  ;;  %v1666_v22 = vpop.f32.mrb[6].mxu1  ;;  %v578_v23 = vpop.f32.mrb[7].mxu0  ;;  %vm852_vm13 = vcmp.gt.f32.partialorder %v712_v15, 0.0 }
  0xf3   : > { %v1526_v24 = vpack.c.bf16 %v943_v19, %v943_v19  ;;  %v1558_v25 = vpack.c.bf16 %v975_v20, %v975_v20  ;;  %v948_v26 = vsel %vm820_vm12, %v584_v8, %v884_v14  ;;  %v706_v27 = vpop.f32.mrb[7].mxu1  ;;  %v916_v29 = vmul.f32 0.1, %v712_v15 }
  0xf4   : > { %1298 = vst.msk [vmem:[%s1870_s27 + $0x8c] sm:$0xf] %vm1262_vm3, %v1560_v18  ;;  %v1531_v28 = vpack.c.bf16 %v948_v26, %v948_v26  ;;  %vm818_vm14 = vcmp.gt.f32.partialorder %v576_v21, 0.0  ;;  %v882_v30 = vmul.f32 0.1, %v576_v21  ;;  %v704_v31 = vadd.f32 %v1858_v38, %v703_v16 }
  0xf5   : > { %1264 = vst.msk [vmem:[%s1870_s27 + $0x4] sm:$0xf] %vm1262_vm3, %v1526_v24  ;;  %1296 = vst.msk [vmem:[%s1870_s27 + $0x84] sm:$0xf] %vm1262_vm3, %v1558_v25  ;;  %v587_v32 = vadd.f32 %v1634_v17, %v1858_v38  ;;  %v715_v33 = vadd.f32 %v1666_v22, %v1858_v38  ;;  %v579_v34 = vadd.f32 %v1858_v38, %v578_v23  ;;  %v1637_v39 = vpop.f32.mrb[8].mxu0 }
  0xf6   : > { %1269 = vst.msk [vmem:[%s1870_s27 + $0x18] sm:$0xf] %vm1262_vm3, %v1531_v28  ;;  %v980_v35 = vsel %vm852_vm13, %v712_v15, %v916_v29  ;;  %v946_v36 = vsel %vm818_vm14, %v576_v21, %v882_v30  ;;  %v707_v37 = vadd.f32 %v1858_v38, %v706_v27  ;;  %vm850_vm15 = vcmp.gt.f32.partialorder %v704_v31, 0.0  ;;  %v1669_v43 = vpop.f32.mrb[8].mxu1  ;;  %v591_v44 = vpop.f32.mrb[9].mxu0 }
  0xf7   : > { %v1563_v40 = vpack.c.bf16 %v980_v35, %v980_v35  ;;  %v1529_v41 = vpack.c.bf16 %v946_v36, %v946_v36  ;;  %v914_v42 = vmul.f32 0.1, %v704_v31  ;;  %vm821_vm0 = vcmp.gt.f32.partialorder %v587_v32, 0.0  ;;  %v719_v49 = vpop.f32.mrb[9].mxu1  ;;  %v1638_v50 = vpop.f32.mrb[10].mxu0 }
  0xf8   : > { %v885_v45 = vmul.f32 0.1, %v587_v32  ;;  %vm853_vm1 = vcmp.gt.f32.partialorder %v715_v33, 0.0  ;;  %v917_v46 = vmul.f32 0.1, %v715_v33  ;;  %vm819_vm2 = vcmp.gt.f32.partialorder %v579_v34, 0.0 }
  0xf9   : > { %1301 = vst.msk [vmem:[%s1870_s27 + $0x98] sm:$0xf] %vm1262_vm3, %v1563_v40  ;;  %1267 = vst.msk [vmem:[%s1870_s27 + $0x10] sm:$0xf] %vm1262_vm3, %v1529_v41  ;;  %v978_v47 = vsel %vm850_vm15, %v704_v31, %v914_v42  ;;  %v883_v48 = vmul.f32 0.1, %v579_v34  ;;  %v600_v60 = vadd.f32 %v1637_v39, %v1858_v38  ;;  %v728_v0 = vadd.f32 %v1669_v43, %v1858_v38 }
  0xfa   : > { %vm851_vm4 = vcmp.gt.f32.partialorder %v707_v37, 0.0  ;;  %v1561_v51 = vpack.c.bf16 %v978_v47, %v978_v47  ;;  %v949_v52 = vsel %vm821_vm0, %v587_v32, %v885_v45  ;;  %v981_v53 = vsel %vm853_vm1, %v715_v33, %v917_v46  ;;  %v1670_v55 = vpop.f32.mrb[10].mxu1  ;;  %v594_v56 = vpop.f32.mrb[11].mxu0 }
  0xfb   : > { %v915_v54 = vmul.f32 0.1, %v707_v37  ;;  %v1532_v57 = vpack.c.bf16 %v949_v52, %v949_v52  ;;  %v1564_v58 = vpack.c.bf16 %v981_v53, %v981_v53  ;;  %v947_v59 = vsel %vm819_vm2, %v579_v34, %v883_v48  ;;  %v722_v61 = vpop.f32.mrb[11].mxu1 }
  0xfc   : > { %1299 = vst.msk [vmem:[%s1870_s27 + $0x90] sm:$0xf] %vm1262_vm3, %v1561_v51  ;;  %v1530_v62 = vpack.c.bf16 %v947_v59, %v947_v59  ;;  %v592_v1 = vadd.f32 %v1858_v38, %v591_v44  ;;  %vm824_vm5 = vcmp.gt.f32.partialorder %v600_v60, 0.0  ;;  %v888_v3 = vmul.f32 0.1, %v600_v60 }
  0xfd   : > { %v979_v63 = vsel %vm851_vm4, %v707_v37, %v915_v54  ;;  %1270 = vst.msk [vmem:[%s1870_s27 + $0x1c] sm:$0xf] %vm1262_vm3, %v1532_v57  ;;  %1302 = vst.msk [vmem:[%s1870_s27 + $0x9c] sm:$0xf] %vm1262_vm3, %v1564_v58  ;;  %v720_v4 = vadd.f32 %v1858_v38, %v719_v49  ;;  %vm856_vm6 = vcmp.gt.f32.partialorder %v728_v0, 0.0  ;;  %v603_v9 = vadd.f32 %v1638_v50, %v1858_v38  ;;  %v1641_v10 = vpop.f32.mrb[12].mxu0 }
  0xfe   : > { %v1562_v2 = vpack.c.bf16 %v979_v63, %v979_v63  ;;  %1268 = vst.msk [vmem:[%s1870_s27 + $0x14] sm:$0xf] %vm1262_vm3, %v1530_v62  ;;  %v920_v5 = vmul.f32 0.1, %v728_v0  ;;  %vm822_vm7 = vcmp.gt.f32.partialorder %v592_v1, 0.0  ;;  %v952_v7 = vsel %vm824_vm5, %v600_v60, %v888_v3  ;;  %v1673_v11 = vpop.f32.mrb[12].mxu1 }
  0xff   : > { %v886_v6 = vmul.f32 0.1, %v592_v1  ;;  %vm854_vm8 = vcmp.gt.f32.partialorder %v720_v4, 0.0  ;;  %v918_v8 = vmul.f32 0.1, %v720_v4  ;;  %v1535_v12 = vpack.c.bf16 %v952_v7, %v952_v7  ;;  %v607_v16 = vpop.f32.mrb[13].mxu0 }
 0x100   : > { %1300 = vst.msk [vmem:[%s1870_s27 + $0x94] sm:$0xf] %vm1262_vm3, %v1562_v2  ;;  %v984_v13 = vsel %vm856_vm6, %v728_v0, %v920_v5  ;;  %v731_v15 = vadd.f32 %v1670_v55, %v1858_v38  ;;  %v735_v17 = vpop.f32.mrb[13].mxu1  ;;  %vm825_vm9 = vcmp.gt.f32.partialorder %v603_v9, 0.0  ;;  %v1642_v21 = vpop.f32.mrb[14].mxu0  ;;  %v595_v27 = vadd.f32 %v1858_v38, %v594_v56 }
 0x101   : > { %v950_v14 = vsel %vm822_vm7, %v592_v1, %v886_v6  ;;  %v1567_v18 = vpack.c.bf16 %v984_v13, %v984_v13  ;;  %v982_v20 = vsel %vm854_vm8, %v720_v4, %v918_v8  ;;  %v1674_v22 = vpop.f32.mrb[14].mxu1  ;;  %1273 = vst.msk [vmem:[%s1870_s27 + $0x28] sm:$0xf] %vm1262_vm3, %v1535_v12  ;;  %v889_v24 = vmul.f32 0.1, %v603_v9  ;;  %v610_v26 = vpop.f32.mrb[15].mxu0 }
 0x102   : > { %v1533_v19 = vpack.c.bf16 %v950_v14, %v950_v14  ;;  %v1565_v23 = vpack.c.bf16 %v982_v20, %v982_v20  ;;  %vm857_vm10 = vcmp.gt.f32.partialorder %v731_v15, 0.0  ;;  %v921_v25 = vmul.f32 0.1, %v731_v15  ;;  %v738_v31 = vpop.f32.mrb[15].mxu1 }
 0x103   : > { %1305 = vst.msk [vmem:[%s1870_s27 + $0xa8] sm:$0xf] %vm1262_vm3, %v1567_v18  ;;  %v723_v28 = vadd.f32 %v1858_v38, %v722_v61  ;;  %v616_v29 = vadd.f32 %v1641_v10, %v1858_v38  ;;  %v744_v30 = vadd.f32 %v1673_v11, %v1858_v38  ;;  %v953_v32 = vsel %vm825_vm9, %v603_v9, %v889_v24 }
 0x104   : > { %1271 = vst.msk [vmem:[%s1870_s27 + $0x20] sm:$0xf] %vm1262_vm3, %v1533_v19  ;;  %1303 = vst.msk [vmem:[%s1870_s27 + $0xa0] sm:$0xf] %vm1262_vm3, %v1565_v23  ;;  %v985_v33 = vsel %vm857_vm10, %v731_v15, %v921_v25  ;;  %v608_v34 = vadd.f32 %v1858_v38, %v607_v16  ;;  %v736_v35 = vadd.f32 %v1858_v38, %v735_v17  ;;  %vm823_vm11 = vcmp.gt.f32.partialorder %v595_v27, 0.0 }
 0x105   : > { %v1536_v36 = vpack.c.bf16 %v953_v32, %v953_v32  ;;  %v1568_v37 = vpack.c.bf16 %v985_v33, %v985_v33  ;;  %v887_v39 = vmul.f32 0.1, %v595_v27  ;;  %vm855_vm12 = vcmp.gt.f32.partialorder %v723_v28, 0.0  ;;  %v1645_v44 = vpop.f32.mrb[16].mxu0 }
 0x106   : > { %v919_v40 = vmul.f32 0.1, %v723_v28  ;;  %vm828_vm13 = vcmp.gt.f32.partialorder %v616_v29, 0.0  ;;  %v892_v41 = vmul.f32 0.1, %v616_v29  ;;  %vm860_vm14 = vcmp.gt.f32.partialorder %v744_v30, 0.0 }
 0x107   : > { %1274 = vst.msk [vmem:[%s1870_s27 + $0x2c] sm:$0xf] %vm1262_vm3, %v1536_v36  ;;  %1306 = vst.msk [vmem:[%s1870_s27 + $0xac] sm:$0xf] %vm1262_vm3, %v1568_v37  ;;  %v951_v42 = vsel %vm823_vm11, %v595_v27, %v887_v39  ;;  %v924_v43 = vmul.f32 0.1, %v744_v30  ;;  %v619_v60 = vadd.f32 %v1642_v21, %v1858_v38  ;;  %v747_v0 = vadd.f32 %v1674_v22, %v1858_v38 }
 0x108   : > { %vm826_vm15 = vcmp.gt.f32.partialorder %v608_v34, 0.0  ;;  %v1677_v45 = vpop.f32.mrb[16].mxu1  ;;  %v1534_v46 = vpack.c.bf16 %v951_v42, %v951_v42  ;;  %v983_v47 = vsel %vm855_vm12, %v723_v28, %v919_v40  ;;  %v956_v48 = vsel %vm828_vm13, %v616_v29, %v892_v41  ;;  %v623_v50 = vpop.f32.mrb[17].mxu0 }
 0x109   : > { %v890_v49 = vmul.f32 0.1, %v608_v34  ;;  %v751_v51 = vpop.f32.mrb[17].mxu1  ;;  %v1566_v52 = vpack.c.bf16 %v983_v47, %v983_v47  ;;  %v1539_v53 = vpack.c.bf16 %v956_v48, %v956_v48  ;;  %v988_v54 = vsel %vm860_vm14, %v744_v30, %v924_v43  ;;  %v1646_v55 = vpop.f32.mrb[18].mxu0 }
 0x10a   : > { %vm858_vm0 = vcmp.gt.f32.partialorder %v736_v35, 0.0  ;;  %v1678_v56 = vpop.f32.mrb[18].mxu1  ;;  %1272 = vst.msk [vmem:[%s1870_s27 + $0x24] sm:$0xf] %vm1262_vm3, %v1534_v46  ;;  %v1571_v57 = vpack.c.bf16 %v988_v54, %v988_v54  ;;  %v922_v59 = vmul.f32 0.1, %v736_v35  ;;  %v611_v1 = vadd.f32 %v1858_v38, %v610_v26 }
 0x10b   : > { %v954_v58 = vsel %vm826_vm15, %v608_v34, %v890_v49  ;;  %v626_v61 = vpop.f32.mrb[19].mxu0  ;;  %v1945_v62 = vpop.f32.mrb[19].mxu1  ;;  %1304 = vst.msk [vmem:[%s1870_s27 + $0xa4] sm:$0xf] %vm1262_vm3, %v1566_v52  ;;  %1277 = vst.msk [vmem:[%s1870_s27 + $0x38] sm:$0xf] %vm1262_vm3, %v1539_v53  ;;  %v739_v2 = vadd.f32 %v1858_v38, %v738_v31  ;;  %v632_v5 = vadd.f32 %v1645_v44, %v1858_v38 }
 0x10c   : > { %v1537_v63 = vpack.c.bf16 %v954_v58, %v954_v58  ;;  %1309 = vst.msk [vmem:[%s1870_s27 + $0xb8] sm:$0xf] %vm1262_vm3, %v1571_v57  ;;  %v986_v3 = vsel %vm858_vm0, %v736_v35, %v922_v59  ;;  %vm829_vm1 = vcmp.gt.f32.partialorder %v619_v60, 0.0  ;;  %v893_v4 = vmul.f32 0.1, %v619_v60 }
 0x10d   : > { %v1569_v6 = vpack.c.bf16 %v986_v3, %v986_v3  ;;  %vm861_vm2 = vcmp.gt.f32.partialorder %v747_v0, 0.0  ;;  %v925_v7 = vmul.f32 0.1, %v747_v0  ;;  %vm827_vm4 = vcmp.gt.f32.partialorder %v611_v1, 0.0  ;;  %v1649_v11 = vpop.f32.mrb[20].mxu0 }
 0x10e   : > { %1275 = vst.msk [vmem:[%s1870_s27 + $0x30] sm:$0xf] %vm1262_vm3, %v1537_v63  ;;  %v957_v8 = vsel %vm829_vm1, %v619_v60, %v893_v4  ;;  %v891_v9 = vmul.f32 0.1, %v611_v1  ;;  %vm859_vm5 = vcmp.gt.f32.partialorder %v739_v2, 0.0  ;;  %vm832_vm6 = vcmp.gt.f32.partialorder %v632_v5, 0.0 }
 0x10f   : > { %v923_v10 = vmul.f32 0.1, %v739_v2  ;;  %1307 = vst.msk [vmem:[%s1870_s27 + $0xb0] sm:$0xf] %vm1262_vm3, %v1569_v6  ;;  %v1540_v12 = vpack.c.bf16 %v957_v8, %v957_v8  ;;  %v989_v13 = vsel %vm861_vm2, %v747_v0, %v925_v7  ;;  %v896_v14 = vmul.f32 0.1, %v632_v5 }
 0x110   : > { %v1681_v15 = vpop.f32.mrb[20].mxu1  ;;  %v639_v16 = vpop.f32.mrb[21].mxu0  ;;  %v1572_v17 = vpack.c.bf16 %v989_v13, %v989_v13  ;;  %v955_v18 = vsel %vm827_vm4, %v611_v1, %v891_v9  ;;  %v760_v20 = vadd.f32 %v1677_v45, %v1858_v38  ;;  %v624_v26 = vadd.f32 %v1858_v38, %v623_v50 }
 0x111   : > { %v987_v19 = vsel %vm859_vm5, %v739_v2, %v923_v10  ;;  %v1963_v21 = vpop.f32.mrb[21].mxu1  ;;  %v1965_v22 = vpop.f32.mrb[22].mxu0  ;;  %1278 = vst.msk [vmem:[%s1870_s27 + $0x3c] sm:$0xf] %vm1262_vm3, %v1540_v12  ;;  %v1538_v23 = vpack.c.bf16 %v955_v18, %v955_v18  ;;  %v960_v25 = vsel %vm832_vm6, %v632_v5, %v896_v14  ;;  %v752_v31 = vadd.f32 %v1858_v38, %v751_v51 }
 0x112   : > { %v1570_v24 = vpack.c.bf16 %v987_v19, %v987_v19  ;;  %v1970_v27 = vpop.f32.mrb[22].mxu1  ;;  %v1972_v28 = vpop.f32.mrb[23].mxu0  ;;  %1310 = vst.msk [vmem:[%s1870_s27 + $0xbc] sm:$0xf] %vm1262_vm3, %v1572_v17  ;;  %v1543_v29 = vpack.c.bf16 %v960_v25, %v960_v25  ;;  %vm864_vm7 = vcmp.gt.f32.partialorder %v760_v20, 0.0  ;;  %vm830_vm8 = vcmp.gt.f32.partialorder %v624_v26, 0.0 }
 0x113   : > { %v928_v30 = vmul.f32 0.1, %v760_v20  ;;  %v1977_v32 = vpop.f32.mrb[23].mxu1  ;;  %1276 = vst.msk [vmem:[%s1870_s27 + $0x34] sm:$0xf] %vm1262_vm3, %v1538_v23  ;;  %v635_v34 = vadd.f32 %v1646_v55, %v1858_v38  ;;  %v763_v35 = vadd.f32 %v1678_v56, %v1858_v38  ;;  %vm862_vm9 = vcmp.gt.f32.partialorder %v752_v31, 0.0 }
 0x114   : > { %1308 = vst.msk [vmem:[%s1870_s27 + $0xb4] sm:$0xf] %vm1262_vm3, %v1570_v24  ;;  %v894_v33 = vmul.f32 0.1, %v624_v26  ;;  %1281 = vst.msk [vmem:[%s1870_s27 + $0x48] sm:$0xf] %vm1262_vm3, %v1543_v29  ;;  %v627_v39 = vadd.f32 %v1858_v38, %v626_v61  ;;  %v755_v54 = vadd.f32 %v1858_v38, %v1945_v62  ;;  %v648_v55 = vadd.f32 %v1649_v11, %v1858_v38 }
 0x115   : > { %v992_v36 = vsel %vm864_vm7, %v760_v20, %v928_v30  ;;  %v926_v37 = vmul.f32 0.1, %v752_v31  ;;  %vm833_vm10 = vcmp.gt.f32.partialorder %v635_v34, 0.0  ;;  %v897_v42 = vmul.f32 0.1, %v635_v34  ;;  %v1988_v46 = vpop.f32.mrb[24].mxu0 }
 0x116   : > { %v1575_v40 = vpack.c.bf16 %v992_v36, %v992_v36  ;;  %v958_v41 = vsel %vm830_vm8, %v624_v26, %v894_v33  ;;  %vm865_vm11 = vcmp.gt.f32.partialorder %v763_v35, 0.0  ;;  %v929_v45 = vmul.f32 0.1, %v763_v35  ;;  %v1685_v50 = vpop.f32.mrb[24].mxu1  ;;  %v1992_v51 = vpop.f32.mrb[25].mxu0 }
 0x117   : > { %v1541_v43 = vpack.c.bf16 %v958_v41, %v958_v41  ;;  %v990_v44 = vsel %vm862_vm9, %v752_v31, %v926_v37  ;;  %v961_v48 = vsel %vm833_vm10, %v635_v34, %v897_v42  ;;  %vm831_vm12 = vcmp.gt.f32.partialorder %v627_v39, 0.0  ;;  %v1999_v56 = vpop.f32.mrb[25].mxu1  ;;  %v2001_v57 = vpop.f32.mrb[26].mxu0 }
 0x118   : > { %1313 = vst.msk [vmem:[%s1870_s27 + $0xc8] sm:$0xf] %vm1262_vm3, %v1575_v40  ;;  %v1573_v47 = vpack.c.bf16 %v990_v44, %v990_v44  ;;  %v895_v49 = vmul.f32 0.1, %v627_v39  ;;  %v1544_v52 = vpack.c.bf16 %v961_v48, %v961_v48  ;;  %v993_v53 = vsel %vm865_vm11, %v763_v35, %v929_v45  ;;  %v2007_v63 = vpop.f32.mrb[26].mxu1  ;;  %v2009_v0 = vpop.f32.mrb[27].mxu0 }
 0x119   : > { %1279 = vst.msk [vmem:[%s1870_s27 + $0x40] sm:$0xf] %vm1262_vm3, %v1541_v43  ;;  %v1576_v58 = vpack.c.bf16 %v993_v53, %v993_v53  ;;  %v776_v60 = vadd.f32 %v1681_v15, %v1858_v38  ;;  %v640_v61 = vadd.f32 %v1858_v38, %v639_v16  ;;  %vm863_vm13 = vcmp.gt.f32.partialorder %v755_v54, 0.0  ;;  %v2013_v2 = vpop.f32.mrb[27].mxu1 }
 0x11a   : > { %1311 = vst.msk [vmem:[%s1870_s27 + $0xc0] sm:$0xf] %vm1262_vm3, %v1573_v47  ;;  %v959_v59 = vsel %vm831_vm12, %v627_v39, %v895_v49  ;;  %1282 = vst.msk [vmem:[%s1870_s27 + $0x4c] sm:$0xf] %vm1262_vm3, %v1544_v52  ;;  %v927_v1 = vmul.f32 0.1, %v755_v54  ;;  %v768_v7 = vadd.f32 %v1858_v38, %v1963_v21  ;;  %v651_v8 = vadd.f32 %v1965_v22, %v1858_v38 }
 0x11b   : > { %v1542_v62 = vpack.c.bf16 %v959_v59, %v959_v59  ;;  %vm836_vm14 = vcmp.gt.f32.partialorder %v648_v55, 0.0  ;;  %1314 = vst.msk [vmem:[%s1870_s27 + $0xcc] sm:$0xf] %vm1262_vm3, %v1576_v58  ;;  %v900_v3 = vmul.f32 0.1, %v648_v55  ;;  %vm868_vm15 = vcmp.gt.f32.partialorder %v776_v60, 0.0 }
 0x11c   : > { %v932_v4 = vmul.f32 0.1, %v776_v60  ;;  %vm834_vm0 = vcmp.gt.f32.partialorder %v640_v61, 0.0  ;;  %v991_v5 = vsel %vm863_vm13, %v755_v54, %v927_v1  ;;  %v898_v6 = vmul.f32 0.1, %v640_v61 }
 0x11d   : > { %1280 = vst.msk [vmem:[%s1870_s27 + $0x44] sm:$0xf] %vm1262_vm3, %v1542_v62  ;;  %v1574_v9 = vpack.c.bf16 %v991_v5, %v991_v5  ;;  %v964_v10 = vsel %vm836_vm14, %v648_v55, %v900_v3  ;;  %v779_v12 = vadd.f32 %v1970_v27, %v1858_v38  ;;  %vm866_vm1 = vcmp.gt.f32.partialorder %v768_v7, 0.0  ;;  %v1657_v16 = vpop.f32.mrb[28].mxu0 }
 0x11e   : > { %v996_v11 = vsel %vm868_vm15, %v776_v60, %v932_v4  ;;  %v1547_v13 = vpack.c.bf16 %v964_v10, %v964_v10  ;;  %v962_v15 = vsel %vm834_vm0, %v640_v61, %v898_v6  ;;  %v930_v18 = vmul.f32 0.1, %v768_v7  ;;  %v2027_v20 = vpop.f32.mrb[28].mxu1  ;;  %v2037_v24 = vpop.f32.mrb[29].mxu0 }
 0x11f   : > { %v1579_v14 = vpack.c.bf16 %v996_v11, %v996_v11  ;;  %1312 = vst.msk [vmem:[%s1870_s27 + $0xc4] sm:$0xf] %vm1262_vm3, %v1574_v9  ;;  %v1545_v17 = vpack.c.bf16 %v962_v15, %v962_v15  ;;  %vm837_vm2 = vcmp.gt.f32.partialorder %v651_v8, 0.0  ;;  %v901_v19 = vmul.f32 0.1, %v651_v8  ;;  %v2039_v25 = vpop.f32.mrb[29].mxu1 }
 0x120   : > { %1285 = vst.msk [vmem:[%s1870_s27 + $0x58] sm:$0xf] %vm1262_vm3, %v1547_v13  ;;  %vm869_vm4 = vcmp.gt.f32.partialorder %v779_v12, 0.0  ;;  %v933_v21 = vmul.f32 0.1, %v779_v12  ;;  %v643_v22 = vadd.f32 %v1858_v38, %v1972_v28  ;;  %v771_v23 = vadd.f32 %v1858_v38, %v1977_v32  ;;  %v2047_v28 = vpop.f32.mrb[30].mxu0 }
 0x121   : > { %1317 = vst.msk [vmem:[%s1870_s27 + $0xd8] sm:$0xf] %vm1262_vm3, %v1579_v14  ;;  %1283 = vst.msk [vmem:[%s1870_s27 + $0x50] sm:$0xf] %vm1262_vm3, %v1545_v17  ;;  %v994_v26 = vsel %vm866_vm1, %v768_v7, %v930_v18  ;;  %v965_v27 = vsel %vm837_vm2, %v651_v8, %v901_v19  ;;  %v664_v29 = vadd.f32 %v1988_v46, %v1858_v38  ;;  %v2049_v31 = vpop.f32.mrb[30].mxu1  ;;  %v2051_v35 = vpop.f32.mrb[31].mxu0 }
 0x122   : > { %v792_v30 = vadd.f32 %v1685_v50, %v1858_v38  ;;  %v1577_v32 = vpack.c.bf16 %v994_v26, %v994_v26  ;;  %v1548_v33 = vpack.c.bf16 %v965_v27, %v965_v27  ;;  %v997_v34 = vsel %vm869_vm4, %v779_v12, %v933_v21  ;;  %v2053_v36 = vpop.f32.mrb[31].mxu1 }
 0x123   : > { %vm835_vm5 = vcmp.gt.f32.partialorder %v643_v22, 0.0  ;;  %v1580_v37 = vpack.c.bf16 %v997_v34, %v997_v34  ;;  %v899_v39 = vmul.f32 0.1, %v643_v22  ;;  %vm867_vm6 = vcmp.gt.f32.partialorder %v771_v23, 0.0 }
 0x124   : > { %v931_v40 = vmul.f32 0.1, %v771_v23  ;;  %1315 = vst.msk [vmem:[%s1870_s27 + $0xd0] sm:$0xf] %vm1262_vm3, %v1577_v32  ;;  %1286 = vst.msk [vmem:[%s1870_s27 + $0x5c] sm:$0xf] %vm1262_vm3, %v1548_v33  ;;  %v656_v45 = vadd.f32 %v1858_v38, %v1992_v51  ;;  %v784_v46 = vadd.f32 %v1858_v38, %v1999_v56  ;;  %v667_v51 = vadd.f32 %v2001_v57, %v1858_v38 }
 0x125   : > { %vm840_vm7 = vcmp.gt.f32.partialorder %v664_v29, 0.0  ;;  %v904_v41 = vmul.f32 0.1, %v664_v29  ;;  %vm872_vm8 = vcmp.gt.f32.partialorder %v792_v30, 0.0  ;;  %v936_v42 = vmul.f32 0.1, %v792_v30 }
 0x126   : > { %1318 = vst.msk [vmem:[%s1870_s27 + $0xdc] sm:$0xf] %vm1262_vm3, %v1580_v37  ;;  %v963_v43 = vsel %vm835_vm5, %v643_v22, %v899_v39  ;;  %v995_v44 = vsel %vm867_vm6, %v771_v23, %v931_v40  ;;  %vm838_vm9 = vcmp.gt.f32.partialorder %v656_v45, 0.0  ;;  %v902_v54 = vmul.f32 0.1, %v656_v45 }
 0x127   : > { %v1546_v47 = vpack.c.bf16 %v963_v43, %v963_v43  ;;  %v1578_v48 = vpack.c.bf16 %v995_v44, %v995_v44  ;;  %v968_v49 = vsel %vm840_vm7, %v664_v29, %v904_v41  ;;  %v1000_v50 = vsel %vm872_vm8, %v792_v30, %v936_v42 }
 0x128   : > { %v1551_v52 = vpack.c.bf16 %v968_v49, %v968_v49  ;;  %v1583_v53 = vpack.c.bf16 %v1000_v50, %v1000_v50  ;;  %vm870_vm10 = vcmp.gt.f32.partialorder %v784_v46, 0.0  ;;  %v934_v55 = vmul.f32 0.1, %v784_v46 }
 0x129   : > { %1284 = vst.msk [vmem:[%s1870_s27 + $0x54] sm:$0xf] %vm1262_vm3, %v1546_v47  ;;  %1316 = vst.msk [vmem:[%s1870_s27 + $0xd4] sm:$0xf] %vm1262_vm3, %v1578_v48  ;;  %v795_v56 = vadd.f32 %v2007_v63, %v1858_v38  ;;  %v966_v58 = vsel %vm838_vm9, %v656_v45, %v902_v54  ;;  %v659_v59 = vadd.f32 %v1858_v38, %v2009_v0  ;;  %vm841_vm11 = vcmp.gt.f32.partialorder %v667_v51, 0.0 }
 0x12a   : > { %1289 = vst.msk [vmem:[%s1870_s27 + $0x68] sm:$0xf] %vm1262_vm3, %v1551_v52  ;;  %1321 = vst.msk [vmem:[%s1870_s27 + $0xe8] sm:$0xf] %vm1262_vm3, %v1583_v53  ;;  %v787_v60 = vadd.f32 %v1858_v38, %v2013_v2  ;;  %v680_v61 = vadd.f32 %v1657_v16, %v1858_v38  ;;  %v1549_v62 = vpack.c.bf16 %v966_v58, %v966_v58  ;;  %v905_v1 = vmul.f32 0.1, %v667_v51 }
 0x12b   : > { %v998_v57 = vsel %vm870_vm10, %v784_v46, %v934_v55  ;;  %vm873_vm12 = vcmp.gt.f32.partialorder %v795_v56, 0.0  ;;  %v937_v63 = vmul.f32 0.1, %v795_v56  ;;  %vm839_vm13 = vcmp.gt.f32.partialorder %v659_v59, 0.0 }
 0x12c   : > { %v1581_v3 = vpack.c.bf16 %v998_v57, %v998_v57  ;;  %1287 = vst.msk [vmem:[%s1870_s27 + $0x60] sm:$0xf] %vm1262_vm3, %v1549_v62  ;;  %v969_v4 = vsel %vm841_vm11, %v667_v51, %v905_v1  ;;  %v903_v5 = vmul.f32 0.1, %v659_v59  ;;  %vm871_vm14 = vcmp.gt.f32.partialorder %v787_v60, 0.0 }
 0x12d   : > { %v935_v0 = vmul.f32 0.1, %v787_v60  ;;  %v1552_v2 = vpack.c.bf16 %v969_v4, %v969_v4  ;;  %v1001_v6 = vsel %vm873_vm12, %v795_v56, %v937_v63  ;;  %vm844_vm15 = vcmp.gt.f32.partialorder %v680_v61, 0.0 }
 0x12e   : > { %1319 = vst.msk [vmem:[%s1870_s27 + $0xe0] sm:$0xf] %vm1262_vm3, %v1581_v3  ;;  %v908_v7 = vmul.f32 0.1, %v680_v61  ;;  %v1584_v8 = vpack.c.bf16 %v1001_v6, %v1001_v6  ;;  %v967_v9 = vsel %vm839_vm13, %v659_v59, %v903_v5  ;;  %v808_v11 = vadd.f32 %v2027_v20, %v1858_v38 }
 0x12f   : > { %v999_v10 = vsel %vm871_vm14, %v787_v60, %v935_v0  ;;  %1290 = vst.msk [vmem:[%s1870_s27 + $0x6c] sm:$0xf] %vm1262_vm3, %v1552_v2  ;;  %v1550_v12 = vpack.c.bf16 %v967_v9, %v967_v9  ;;  %v672_v15 = vadd.f32 %v1858_v38, %v2037_v24  ;;  %v800_v18 = vadd.f32 %v1858_v38, %v2039_v25 }
 0x130   : > { %v1582_v13 = vpack.c.bf16 %v999_v10, %v999_v10  ;;  %v972_v14 = vsel %vm844_vm15, %v680_v61, %v908_v7  ;;  %1322 = vst.msk [vmem:[%s1870_s27 + $0xec] sm:$0xf] %vm1262_vm3, %v1584_v8  ;;  %vm876_vm0 = vcmp.gt.f32.partialorder %v808_v11, 0.0  ;;  %v940_v17 = vmul.f32 0.1, %v808_v11 }
 0x131   : > { %v1555_v16 = vpack.c.bf16 %v972_v14, %v972_v14  ;;  %1288 = vst.msk [vmem:[%s1870_s27 + $0x64] sm:$0xf] %vm1262_vm3, %v1550_v12  ;;  %vm842_vm1 = vcmp.gt.f32.partialorder %v672_v15, 0.0  ;;  %v906_v19 = vmul.f32 0.1, %v672_v15  ;;  %v683_v20 = vadd.f32 %v2047_v28, %v1858_v38 }
 0x132   : > { %1320 = vst.msk [vmem:[%s1870_s27 + $0xe4] sm:$0xf] %vm1262_vm3, %v1582_v13  ;;  %v811_v21 = vadd.f32 %v2049_v31, %v1858_v38  ;;  %v1004_v22 = vsel %vm876_vm0, %v808_v11, %v940_v17  ;;  %vm874_vm2 = vcmp.gt.f32.partialorder %v800_v18, 0.0  ;;  %v938_v23 = vmul.f32 0.1, %v800_v18 }
 0x133   : > { %1293 = vst.msk [vmem:[%s1870_s27 + $0x78] sm:$0xf] %vm1262_vm3, %v1555_v16  ;;  %v675_v24 = vadd.f32 %v1858_v38, %v2051_v35  ;;  %v1587_v25 = vpack.c.bf16 %v1004_v22, %v1004_v22  ;;  %v970_v26 = vsel %vm842_vm1, %v672_v15, %v906_v19  ;;  %vm845_vm4 = vcmp.gt.f32.partialorder %v683_v20, 0.0 }
 0x134   : > { %v909_v27 = vmul.f32 0.1, %v683_v20  ;;  %v1553_v29 = vpack.c.bf16 %v970_v26, %v970_v26  ;;  %v1002_v30 = vsel %vm874_vm2, %v800_v18, %v938_v23  ;;  %vm877_vm5 = vcmp.gt.f32.partialorder %v811_v21, 0.0 }
 0x135   : > { %v941_v28 = vmul.f32 0.1, %v811_v21  ;;  %1325 = vst.msk [vmem:[%s1870_s27 + $0xf8] sm:$0xf] %vm1262_vm3, %v1587_v25  ;;  %v1585_v31 = vpack.c.bf16 %v1002_v30, %v1002_v30  ;;  %vm843_vm6 = vcmp.gt.f32.partialorder %v675_v24, 0.0  ;;  %v803_v37 = vadd.f32 %v1858_v38, %v2053_v36 }
 0x136   : > { %v973_v32 = vsel %vm845_vm4, %v683_v20, %v909_v27  ;;  %v907_v33 = vmul.f32 0.1, %v675_v24  ;;  %1291 = vst.msk [vmem:[%s1870_s27 + $0x70] sm:$0xf] %vm1262_vm3, %v1553_v29 }
 0x137   : > { %v1556_v34 = vpack.c.bf16 %v973_v32, %v973_v32  ;;  %v1005_v35 = vsel %vm877_vm5, %v811_v21, %v941_v28  ;;  %1323 = vst.msk [vmem:[%s1870_s27 + $0xf0] sm:$0xf] %vm1262_vm3, %v1585_v31  ;;  %vm875_vm7 = vcmp.gt.f32.partialorder %v803_v37, 0.0  ;;  %v939_v42 = vmul.f32 0.1, %v803_v37 }
 0x138   : > { %v1588_v39 = vpack.c.bf16 %v1005_v35, %v1005_v35  ;;  %v971_v40 = vsel %vm843_vm6, %v675_v24, %v907_v33 }
 0x139   : > { %1294 = vst.msk [vmem:[%s1870_s27 + $0x7c] sm:$0xf] %vm1262_vm3, %v1556_v34  ;;  %v1554_v41 = vpack.c.bf16 %v971_v40, %v971_v40  ;;  %v1003_v43 = vsel %vm875_vm7, %v803_v37, %v939_v42 }
 0x13a   : > { %1326 = vst.msk [vmem:[%s1870_s27 + $0xfc] sm:$0xf] %vm1262_vm3, %v1588_v39  ;;  %v1586_v44 = vpack.c.bf16 %v1003_v43, %v1003_v43 }
 0x13b   : > { %1292 = vst.msk [vmem:[%s1870_s27 + $0x74] sm:$0xf] %vm1262_vm3, %v1554_v41 }
 0x13c   : > { %1324 = vst.msk [vmem:[%s1870_s27 + $0xf4] sm:$0xf] %vm1262_vm3, %v1586_v44 }
 0x13d PF: > { %s13_s12 = sadd.s32 1, %s1744_s12  }
 0x13e   : > { %p10_p4 = scmp.ge.s32.totalorder %s13_s12, 6  }
 0x140   :  { %12 = sbr.rel (!%p10_p4) target bundleno = 1 (0x1), region = 62 }

</bundles_post_ra>
